<compile_context>
chip_gen: v6e
topology: v6e:2x2x1
jax: 0.10.0
libtpu: 0.0.40
codegen_flags: <defaults>
</compile_context>

<pallas_src>
import jax
import jax.numpy as jnp
from jax.experimental import pallas as pl
from jax.experimental.pallas import tpu as pltpu


# ----------------------------------------------------------------------------
# Fused forward kernel
# ----------------------------------------------------------------------------
def _make_fused_kernel(n_enc, n_dec, n_zrest, compute_dtype):
    """Ref order: x_rows, x_last, enc(w,b)*, dec(w,b)*, (w0a,w0b,w0c,b0),
    zact_rest(w,b)*, koopman, out_slab."""

    def kernel(*refs):
        it = iter(refs)
        x_ref = next(it)
        xlast_ref = next(it)
        enc = [(next(it), next(it)) for _ in range(n_enc)]
        dec = [(next(it), next(it)) for _ in range(n_dec)]
        w0a_ref, w0b_ref, w0c_ref, b0_ref = next(it), next(it), next(it), next(it)
        zrest = [(next(it), next(it)) for _ in range(n_zrest)]
        koop_ref = next(it)
        out_ref = next(it)

        R, D = x_ref.shape                 # R = TB * T flattened rows
        TB = xlast_ref.shape[0]
        T = R // TB
        L = koop_ref.shape[1]
        cd = compute_dtype

        def mlp(h, layers):
            # Linear->ReLU hidden layers, plain Linear output.
            # cd (bf16) MXU operands, f32 accumulation, f32 epilogue (VPU).
            out = h
            n = len(layers)
            for i, (w_ref, b_ref) in enumerate(layers):
                y = jnp.dot(out, w_ref[...], preferred_element_type=jnp.float32)
                y = y + b_ref[...]                     # (1, N) broadcast, f32
                out = jnp.maximum(y, 0.0).astype(cd) if i < n - 1 else y
            return out                                  # last layer stays f32

        # Cast the block to compute dtype ONCE; reused by encoder and z_act.
        xc = x_ref[...].astype(cd)                       # (R, D)

        # obs_forward(training=True): zx = enc(x); x_recon = dec(zx).
        zx = mlp(xc, enc)                                # (R, L) f32
        x_recon = mlp(zx.astype(cd), dec)                # (R, D) f32

        # get_z_act (k = -1), computed for every row r = b*T + t as the triple
        # (x[b,t], x[b,t+1], x[b,T-1]); only rows t <= T-3 are ever read back.
        x_next = jnp.concatenate(                        # x[b, t+1] (row shift)
            [xc[1:, :], jnp.zeros((1, D), cd)], axis=0)
        tgt = jnp.dot(xlast_ref[...].astype(cd), w0c_ref[...],
                      preferred_element_type=jnp.float32)        # (TB, H) rank-1
        H = tgt.shape[-1]
        tgt_rows = jnp.broadcast_to(tgt[:, None, :], (TB, T, H)).reshape(R, H)
        z0 = (jnp.dot(xc, w0a_ref[...], preferred_element_type=jnp.float32)
              + jnp.dot(x_next, w0b_ref[...], preferred_element_type=jnp.float32)
              + tgt_rows + b0_ref[...])
        if n_zrest > 0:
            idm = mlp(jnp.maximum(z0, 0.0).astype(cd), zrest)    # (R, L) f32
        else:
            idm = z0

        # Fused diagonal-koopman epilogue: pred[b,t] = zx[b,t+1]*koop + idm[b,t]
        zx_next = jnp.concatenate(
            [zx[1:, :], jnp.zeros((1, L), zx.dtype)], axis=0)
        pred = zx_next * koop_ref[...] + idm                     # (R, L) f32

        # One lane-padded 128-wide slab [x_recon | zx | pred | 0] -> unmasked
        # full-lane stores, single output writeback stream.
        parts = [x_recon, zx, pred]
        pad = out_ref.shape[1] - (D + 2 * L)
        if pad > 0:
            parts.append(jnp.zeros((R, pad), jnp.float32))
        out_ref[...] = jnp.concatenate(parts, axis=-1)

    return kernel


def _choose_batch_tile(B, T, rows_budget=1024):
    """One grid step whenever everything fits ~1024 rows (per-step overhead and
    MXU fill dominate; VMEM is not binding -- weights + activations are well
    under 2 MiB).  For larger B*T pick the largest 8-aligned divisor of B that
    fits the budget, so the grid (and v7x megacore split) only kicks in when
    each step has real work (>= ~512 rows per core)."""
    if B * T <= rows_budget:
        return B
    best = None
    for d in range(1, rows_budget // max(T, 1) + 1):
        if B % d == 0 and d % 8 == 0:
            best = d
    if best is None:
        # TODO(synk): pad B to a multiple of 8 instead of one oversized block.
        return B
    return best


def koopman_autoencoder_pretrain_forward(params, x, *, compute_dtype=jnp.bfloat16):
    """x: (B, T, input_dim) f32 -> (x_recon, zx_prime, pred_zx_prime, zx)."""
    B, T, D = x.shape
    enc, dec, zact = params["x_encoder"], params["x_decoder"], params["z_act"]
    koop = params["koopman"]
    L = koop.shape[0]
    w0, b0 = zact[0]
    H0 = w0.shape[1]
    assert w0.shape[0] == 3 * D, "z_act layer 0 must take the 3*input_dim concat"

    TB = _choose_batch_tile(B, T)
    grid = (B // TB,)
    OUT = 128 * pl.cdiv(D + 2 * L, 128)      # lane-dense output slab width

    rowmap = lambda i: (i, 0)                # tile along flattened rows / batch
    const = lambda i: (0, 0)                 # VMEM-resident across the grid

    x2 = x.reshape(B * T, D)                 # flattened rows (free in XLA)
    xlast = x[:, T - 1, :]                   # per-batch target row (B, D)

    args = [x2, xlast]
    in_specs = [pl.BlockSpec((TB * T, D), rowmap),
                pl.BlockSpec((TB, D), rowmap)]

    def add_linear(w, b):
        args.append(w.astype(compute_dtype))
        args.append(b.reshape(1, -1).astype(jnp.float32))
        in_specs.append(pl.BlockSpec(tuple(w.shape), const))
        in_specs.append(pl.BlockSpec((1, b.shape[0]), const))

    for w, b in enc:
        add_linear(w, b)
    for w, b in dec:
        add_linear(w, b)
    # z_act layer 0 split into [prev | cur | target] D-wide weight slabs.
    for w_part in (w0[:D], w0[D:2 * D], w0[2 * D:]):
        args.append(w_part.astype(compute_dtype))
        in_specs.append(pl.BlockSpec((D, H0), const))
    args.append(b0.reshape(1, -1).astype(jnp.float32))
    in_specs.append(pl.BlockSpec((1, H0), const))
    for w, b in zact[1:]:
        add_linear(w, b)
    args.append(koop.reshape(1, L).astype(jnp.float32))
    in_specs.append(pl.BlockSpec((1, L), const))

    kernel = _make_fused_kernel(len(enc), len(dec), len(zact) - 1, compute_dtype)

    slab = pl.pallas_call(
        kernel,
        out_shape=jax.ShapeDtypeStruct((B * T, OUT), jnp.float32),
        grid=grid,
        in_specs=in_specs,
        out_specs=pl.BlockSpec((TB * T, OUT), rowmap),
        compiler_params=pltpu.CompilerParams(
            dimension_semantics=("parallel",)),
    )(*args)

    slab = slab.reshape(B, T, OUT)
    x_recon = slab[..., :D]                       # (B, T, D)
    zx = slab[..., D:D + L]                       # (B, T, L)
    pred_zx_prime = slab[:, 0:T - 2, D + L:D + 2 * L]   # (B, T-2, L)
    zx_prime = zx[:, 2:, :]                       # (B, T-2, L)
    return x_recon, zx_prime, pred_zx_prime, zx


# ----------------------------------------------------------------------------
# Parameter construction (PyTorch-init-equivalent) and pure-JAX reference
# ----------------------------------------------------------------------------
def kaiming_linear(key, in_dim, out_dim):
    # nn.init.kaiming_normal_(weight, mode='fan_out', nonlinearity='relu') on a
    # torch Linear weight (out,in): fan_out == out_features -> std=sqrt(2/out).
    std = (2.0 / out_dim) ** 0.5
    w = std * jax.random.normal(key, (in_dim, out_dim), jnp.float32)
    b = jnp.zeros((out_dim,), jnp.float32)
    return w, b


def make_mlp_params(key, in_dim, hidden_dims, out_dim):
    dims = [in_dim] + list(hidden_dims) + [out_dim]
    keys = jax.random.split(key, len(dims) - 1)
    return [kaiming_linear(k, di, do)
            for k, di, do in zip(keys, dims[:-1], dims[1:])]


def _reference_forward(params, x, compute_dtype):
    """Pure-JAX forward with the same bf16 rounding as the kernel (tolerance
    reference for the time-alignment / koopman-diagonal correctness checks)."""
    cd = compute_dtype
    B, T, D = x.shape

    def mlp(h, layers):
        out = h.astype(cd)
        n = len(layers)
        for i, (w, b) in enumerate(layers):
            y = jnp.dot(out, w.astype(cd), preferred_element_type=jnp.float32) + b
            out = jnp.maximum(y, 0.0).astype(cd) if i < n - 1 else y
        return out

    zx = mlp(x.reshape(B * T, D), params["x_encoder"]).reshape(B, T, -1)
    L = zx.shape[-1]
    x_recon = mlp(zx.reshape(B * T, L), params["x_decoder"]).reshape(B, T, D)
    x_tgt = jnp.broadcast_to(x[:, -1:, :], (B, T - 2, D))
    z_in = jnp.concatenate([x[:, 0:T - 2, :], x[:, 1:T - 1, :], x_tgt], axis=-1)
    idm = mlp(z_in.reshape(B * (T - 2), 3 * D), params["z_act"]).reshape(B, T - 2, L)
    pred = zx[:, 1:T - 1, :] * params["koopman"] + idm
    return x_recon, zx[:, 2:, :], pred, zx


# ----------------------------------------------------------------------------
# Main
# ----------------------------------------------------------------------------
if __name__ == "__main__":
    key = jax.random.PRNGKey(0)
    B, T = 2, 8
    input_dim, latent_dim, action_dim = 16, 32, 4
    hidden_dims = [32, 32]

    k_x, k_enc, k_dec, k_zact, k_koop, k_adec = jax.random.split(key, 6)
    params = {
        "x_encoder": make_mlp_params(k_enc, input_dim, hidden_dims, latent_dim),
        "x_decoder": make_mlp_params(k_dec, latent_dim, hidden_dims, input_dim),
        "z_act": make_mlp_params(k_zact, 3 * input_dim, [256, 256], latent_dim),
        "koopman": jax.random.normal(k_koop, (latent_dim,), jnp.float32),
        # act_decoder is unused by forward(); kept only for __init__ parity.
        "act_decoder": make_mlp_params(k_adec, latent_dim, [], action_dim),
    }
    x = jax.random.normal(k_x, (B, T, input_dim), jnp.float32)

    fwd = jax.jit(koopman_autoencoder_pretrain_forward)
    outs = jax.block_until_ready(fwd(params, x))
    x_recon, zx_prime, pred_zx_prime, zx = outs

    assert x_recon.shape == (B, T, input_dim)
    assert zx.shape == (B, T, latent_dim)
    assert zx_prime.shape == (B, T - 2, latent_dim)
    assert pred_zx_prime.shape == (B, T - 2, latent_dim)
    for o in outs:
        assert bool(jnp.all(jnp.isfinite(o)))

    # Numerics vs a pure-JAX reference using identical bf16 weight/activation
    # rounding (documented deviation from fp32 PyTorch Linear).
    refs = _reference_forward(params, x, jnp.bfloat16)
    for name, got, want in zip(("x_recon", "zx_prime", "pred_zx_prime", "zx"),
                               outs, refs):
        err = float(jnp.max(jnp.abs(got - want)))
        assert err < 5e-2, f"{name} mismatch vs reference, max_abs_err={err}"

    print("KERNEL_OK")
</pallas_src>

<mosaic_0001>
module attributes {stable_mosaic.version = 11 : i64} {
  func.func @kernel(%arg0: i32, %arg1: memref<16x16xf32, #tpu.memory_space<vmem>>, %arg2: memref<2x16xf32, #tpu.memory_space<vmem>>, %arg3: memref<16x32xbf16, #tpu.memory_space<vmem>>, %arg4: memref<1x32xf32, #tpu.memory_space<vmem>>, %arg5: memref<32x32xbf16, #tpu.memory_space<vmem>>, %arg6: memref<1x32xf32, #tpu.memory_space<vmem>>, %arg7: memref<32x32xbf16, #tpu.memory_space<vmem>>, %arg8: memref<1x32xf32, #tpu.memory_space<vmem>>, %arg9: memref<32x32xbf16, #tpu.memory_space<vmem>>, %arg10: memref<1x32xf32, #tpu.memory_space<vmem>>, %arg11: memref<32x32xbf16, #tpu.memory_space<vmem>>, %arg12: memref<1x32xf32, #tpu.memory_space<vmem>>, %arg13: memref<32x16xbf16, #tpu.memory_space<vmem>>, %arg14: memref<1x16xf32, #tpu.memory_space<vmem>>, %arg15: memref<16x256xbf16, #tpu.memory_space<vmem>>, %arg16: memref<16x256xbf16, #tpu.memory_space<vmem>>, %arg17: memref<16x256xbf16, #tpu.memory_space<vmem>>, %arg18: memref<1x256xf32, #tpu.memory_space<vmem>>, %arg19: memref<256x256xbf16, #tpu.memory_space<vmem>>, %arg20: memref<1x256xf32, #tpu.memory_space<vmem>>, %arg21: memref<256x32xbf16, #tpu.memory_space<vmem>>, %arg22: memref<1x32xf32, #tpu.memory_space<vmem>>, %arg23: memref<1x32xf32, #tpu.memory_space<vmem>>, %arg24: memref<16x128xf32, #tpu.memory_space<vmem>>) attributes {dimension_semantics = [#tpu.dimension_semantics<parallel>], iteration_bounds = array<i64: 1>, scalar_prefetch = 0 : i64, scratch_operands = 0 : i64, tpu.core_type = #tpu.core_type<tc>, window_params = [{transform_indices = @transform_0, window_bounds = array<i64: 16, 16>}, {transform_indices = @transform_1, window_bounds = array<i64: 2, 16>}, {pipeline_mode = #tpu.pipeline_mode<synchronous>, transform_indices = @transform_2, window_bounds = array<i64: 16, 32>}, {pipeline_mode = #tpu.pipeline_mode<synchronous>, transform_indices = @transform_3, window_bounds = array<i64: 1, 32>}, {pipeline_mode = #tpu.pipeline_mode<synchronous>, transform_indices = @transform_4, window_bounds = array<i64: 32, 32>}, {pipeline_mode = #tpu.pipeline_mode<synchronous>, transform_indices = @transform_5, window_bounds = array<i64: 1, 32>}, {pipeline_mode = #tpu.pipeline_mode<synchronous>, transform_indices = @transform_6, window_bounds = array<i64: 32, 32>}, {pipeline_mode = #tpu.pipeline_mode<synchronous>, transform_indices = @transform_7, window_bounds = array<i64: 1, 32>}, {pipeline_mode = #tpu.pipeline_mode<synchronous>, transform_indices = @transform_8, window_bounds = array<i64: 32, 32>}, {pipeline_mode = #tpu.pipeline_mode<synchronous>, transform_indices = @transform_9, window_bounds = array<i64: 1, 32>}, {pipeline_mode = #tpu.pipeline_mode<synchronous>, transform_indices = @transform_10, window_bounds = array<i64: 32, 32>}, {pipeline_mode = #tpu.pipeline_mode<synchronous>, transform_indices = @transform_11, window_bounds = array<i64: 1, 32>}, {pipeline_mode = #tpu.pipeline_mode<synchronous>, transform_indices = @transform_12, window_bounds = array<i64: 32, 16>}, {pipeline_mode = #tpu.pipeline_mode<synchronous>, transform_indices = @transform_13, window_bounds = array<i64: 1, 16>}, {pipeline_mode = #tpu.pipeline_mode<synchronous>, transform_indices = @transform_14, window_bounds = array<i64: 16, 256>}, {pipeline_mode = #tpu.pipeline_mode<synchronous>, transform_indices = @transform_15, window_bounds = array<i64: 16, 256>}, {pipeline_mode = #tpu.pipeline_mode<synchronous>, transform_indices = @transform_16, window_bounds = array<i64: 16, 256>}, {pipeline_mode = #tpu.pipeline_mode<synchronous>, transform_indices = @transform_17, window_bounds = array<i64: 1, 256>}, {pipeline_mode = #tpu.pipeline_mode<synchronous>, transform_indices = @transform_18, window_bounds = array<i64: 256, 256>}, {pipeline_mode = #tpu.pipeline_mode<synchronous>, transform_indices = @transform_19, window_bounds = array<i64: 1, 256>}, {pipeline_mode = #tpu.pipeline_mode<synchronous>, transform_indices = @transform_20, window_bounds = array<i64: 256, 32>}, {pipeline_mode = #tpu.pipeline_mode<synchronous>, transform_indices = @transform_21, window_bounds = array<i64: 1, 32>}, {pipeline_mode = #tpu.pipeline_mode<synchronous>, transform_indices = @transform_22, window_bounds = array<i64: 1, 32>}, {transform_indices = @transform_23, window_bounds = array<i64: 16, 128>}]} {
    %c0 = arith.constant 0 : index
    %c0_0 = arith.constant 0 : index
    %0 = vector.load %arg1[%c0, %c0_0] : memref<16x16xf32, #tpu.memory_space<vmem>>, vector<16x16xf32>
    %1 = arith.truncf %0 : vector<16x16xf32> to vector<16x16xbf16>
    %c0_1 = arith.constant 0 : index
    %c0_2 = arith.constant 0 : index
    %2 = vector.load %arg3[%c0_1, %c0_2] : memref<16x32xbf16, #tpu.memory_space<vmem>>, vector<16x32xbf16>
    %cst = arith.constant dense<0.000000e+00> : vector<16x32xf32>
    %3 = tpu.matmul %1, %2, %cst {dimension_numbers = #tpu.dot_dimension_numbers<[1], [0], [0], [1], [0, 0, 1, 1], [], []>} : vector<16x16xbf16>, vector<16x32xbf16>, vector<16x32xf32> -> vector<16x32xf32>
    %c0_3 = arith.constant 0 : index
    %c0_4 = arith.constant 0 : index
    %4 = vector.load %arg4[%c0_3, %c0_4] : memref<1x32xf32, #tpu.memory_space<vmem>>, vector<1x32xf32>
    %5 = vector.broadcast %4 : vector<1x32xf32> to vector<16x32xf32>
    %6 = arith.addf %3, %5 : vector<16x32xf32>
    %cst_5 = arith.constant 0.000000e+00 : f32
    %7 = vector.broadcast %cst_5 : f32 to vector<16x32xf32>
    %8 = arith.maximumf %6, %7 : vector<16x32xf32>
    %9 = arith.truncf %8 : vector<16x32xf32> to vector<16x32xbf16>
    %c0_6 = arith.constant 0 : index
    %c0_7 = arith.constant 0 : index
    %10 = vector.load %arg5[%c0_6, %c0_7] : memref<32x32xbf16, #tpu.memory_space<vmem>>, vector<32x32xbf16>
    %cst_8 = arith.constant dense<0.000000e+00> : vector<16x32xf32>
    %11 = tpu.matmul %9, %10, %cst_8 {dimension_numbers = #tpu.dot_dimension_numbers<[1], [0], [0], [1], [0, 0, 1, 1], [], []>} : vector<16x32xbf16>, vector<32x32xbf16>, vector<16x32xf32> -> vector<16x32xf32>
    %c0_9 = arith.constant 0 : index
    %c0_10 = arith.constant 0 : index
    %12 = vector.load %arg6[%c0_9, %c0_10] : memref<1x32xf32, #tpu.memory_space<vmem>>, vector<1x32xf32>
    %13 = vector.broadcast %12 : vector<1x32xf32> to vector<16x32xf32>
    %14 = arith.addf %11, %13 : vector<16x32xf32>
    %cst_11 = arith.constant 0.000000e+00 : f32
    %15 = vector.broadcast %cst_11 : f32 to vector<16x32xf32>
    %16 = arith.maximumf %14, %15 : vector<16x32xf32>
    %17 = arith.truncf %16 : vector<16x32xf32> to vector<16x32xbf16>
    %c0_12 = arith.constant 0 : index
    %c0_13 = arith.constant 0 : index
    %18 = vector.load %arg7[%c0_12, %c0_13] : memref<32x32xbf16, #tpu.memory_space<vmem>>, vector<32x32xbf16>
    %cst_14 = arith.constant dense<0.000000e+00> : vector<16x32xf32>
    %19 = tpu.matmul %17, %18, %cst_14 {dimension_numbers = #tpu.dot_dimension_numbers<[1], [0], [0], [1], [0, 0, 1, 1], [], []>} : vector<16x32xbf16>, vector<32x32xbf16>, vector<16x32xf32> -> vector<16x32xf32>
    %c0_15 = arith.constant 0 : index
    %c0_16 = arith.constant 0 : index
    %20 = vector.load %arg8[%c0_15, %c0_16] : memref<1x32xf32, #tpu.memory_space<vmem>>, vector<1x32xf32>
    %21 = vector.broadcast %20 : vector<1x32xf32> to vector<16x32xf32>
    %22 = arith.addf %19, %21 : vector<16x32xf32>
    %23 = arith.truncf %22 : vector<16x32xf32> to vector<16x32xbf16>
    %c0_17 = arith.constant 0 : index
    %c0_18 = arith.constant 0 : index
    %24 = vector.load %arg9[%c0_17, %c0_18] : memref<32x32xbf16, #tpu.memory_space<vmem>>, vector<32x32xbf16>
    %cst_19 = arith.constant dense<0.000000e+00> : vector<16x32xf32>
    %25 = tpu.matmul %23, %24, %cst_19 {dimension_numbers = #tpu.dot_dimension_numbers<[1], [0], [0], [1], [0, 0, 1, 1], [], []>} : vector<16x32xbf16>, vector<32x32xbf16>, vector<16x32xf32> -> vector<16x32xf32>
    %c0_20 = arith.constant 0 : index
    %c0_21 = arith.constant 0 : index
    %26 = vector.load %arg10[%c0_20, %c0_21] : memref<1x32xf32, #tpu.memory_space<vmem>>, vector<1x32xf32>
    %27 = vector.broadcast %26 : vector<1x32xf32> to vector<16x32xf32>
    %28 = arith.addf %25, %27 : vector<16x32xf32>
    %cst_22 = arith.constant 0.000000e+00 : f32
    %29 = vector.broadcast %cst_22 : f32 to vector<16x32xf32>
    %30 = arith.maximumf %28, %29 : vector<16x32xf32>
    %31 = arith.truncf %30 : vector<16x32xf32> to vector<16x32xbf16>
    %c0_23 = arith.constant 0 : index
    %c0_24 = arith.constant 0 : index
    %32 = vector.load %arg11[%c0_23, %c0_24] : memref<32x32xbf16, #tpu.memory_space<vmem>>, vector<32x32xbf16>
    %cst_25 = arith.constant dense<0.000000e+00> : vector<16x32xf32>
    %33 = tpu.matmul %31, %32, %cst_25 {dimension_numbers = #tpu.dot_dimension_numbers<[1], [0], [0], [1], [0, 0, 1, 1], [], []>} : vector<16x32xbf16>, vector<32x32xbf16>, vector<16x32xf32> -> vector<16x32xf32>
    %c0_26 = arith.constant 0 : index
    %c0_27 = arith.constant 0 : index
    %34 = vector.load %arg12[%c0_26, %c0_27] : memref<1x32xf32, #tpu.memory_space<vmem>>, vector<1x32xf32>
    %35 = vector.broadcast %34 : vector<1x32xf32> to vector<16x32xf32>
    %36 = arith.addf %33, %35 : vector<16x32xf32>
    %cst_28 = arith.constant 0.000000e+00 : f32
    %37 = vector.broadcast %cst_28 : f32 to vector<16x32xf32>
    %38 = arith.maximumf %36, %37 : vector<16x32xf32>
    %39 = arith.truncf %38 : vector<16x32xf32> to vector<16x32xbf16>
    %c0_29 = arith.constant 0 : index
    %c0_30 = arith.constant 0 : index
    %40 = vector.load %arg13[%c0_29, %c0_30] : memref<32x16xbf16, #tpu.memory_space<vmem>>, vector<32x16xbf16>
    %cst_31 = arith.constant dense<0.000000e+00> : vector<16x16xf32>
    %41 = tpu.matmul %39, %40, %cst_31 {dimension_numbers = #tpu.dot_dimension_numbers<[1], [0], [0], [1], [0, 0, 1, 1], [], []>} : vector<16x32xbf16>, vector<32x16xbf16>, vector<16x16xf32> -> vector<16x16xf32>
    %c0_32 = arith.constant 0 : index
    %c0_33 = arith.constant 0 : index
    %42 = vector.load %arg14[%c0_32, %c0_33] : memref<1x16xf32, #tpu.memory_space<vmem>>, vector<1x16xf32>
    %43 = vector.broadcast %42 : vector<1x16xf32> to vector<16x16xf32>
    %44 = arith.addf %41, %43 : vector<16x16xf32>
    %45 = vector.extract_strided_slice %1 {offsets = [1, 0], sizes = [15, 16], strides = [1, 1]} : vector<16x16xbf16> to vector<15x16xbf16>
    %cst_34 = arith.constant 0.000000e+00 : bf16
    %46 = vector.broadcast %cst_34 : bf16 to vector<1x16xbf16>
    %47 = tpu.concatenate %45, %46 in 0 : vector<15x16xbf16>, vector<1x16xbf16> -> vector<16x16xbf16>
    %c0_35 = arith.constant 0 : index
    %c0_36 = arith.constant 0 : index
    %48 = vector.load %arg2[%c0_35, %c0_36] : memref<2x16xf32, #tpu.memory_space<vmem>>, vector<2x16xf32>
    %49 = arith.truncf %48 : vector<2x16xf32> to vector<2x16xbf16>
    %c0_37 = arith.constant 0 : index
    %c0_38 = arith.constant 0 : index
    %50 = vector.load %arg17[%c0_37, %c0_38] : memref<16x256xbf16, #tpu.memory_space<vmem>>, vector<16x256xbf16>
    %cst_39 = arith.constant dense<0.000000e+00> : vector<2x256xf32>
    %51 = tpu.matmul %49, %50, %cst_39 {dimension_numbers = #tpu.dot_dimension_numbers<[1], [0], [0], [1], [0, 0, 1, 1], [], []>} : vector<2x16xbf16>, vector<16x256xbf16>, vector<2x256xf32> -> vector<2x256xf32>
    %52 = vector.shape_cast %51 : vector<2x256xf32> to vector<2x1x256xf32>
    %53 = vector.shape_cast %52 : vector<2x1x256xf32> to vector<2x1x256xf32>
    %54 = vector.broadcast %53 : vector<2x1x256xf32> to vector<2x8x256xf32>
    %55 = vector.shape_cast %54 : vector<2x8x256xf32> to vector<16x256xf32>
    %c0_40 = arith.constant 0 : index
    %c0_41 = arith.constant 0 : index
    %56 = vector.load %arg15[%c0_40, %c0_41] : memref<16x256xbf16, #tpu.memory_space<vmem>>, vector<16x256xbf16>
    %cst_42 = arith.constant dense<0.000000e+00> : vector<16x256xf32>
    %57 = tpu.matmul %1, %56, %cst_42 {dimension_numbers = #tpu.dot_dimension_numbers<[1], [0], [0], [1], [0, 0, 1, 1], [], []>} : vector<16x16xbf16>, vector<16x256xbf16>, vector<16x256xf32> -> vector<16x256xf32>
    %c0_43 = arith.constant 0 : index
    %c0_44 = arith.constant 0 : index
    %58 = vector.load %arg16[%c0_43, %c0_44] : memref<16x256xbf16, #tpu.memory_space<vmem>>, vector<16x256xbf16>
    %cst_45 = arith.constant dense<0.000000e+00> : vector<16x256xf32>
    %59 = tpu.matmul %47, %58, %cst_45 {dimension_numbers = #tpu.dot_dimension_numbers<[1], [0], [0], [1], [0, 0, 1, 1], [], []>} : vector<16x16xbf16>, vector<16x256xbf16>, vector<16x256xf32> -> vector<16x256xf32>
    %60 = arith.addf %57, %59 : vector<16x256xf32>
    %61 = arith.addf %60, %55 : vector<16x256xf32>
    %c0_46 = arith.constant 0 : index
    %c0_47 = arith.constant 0 : index
    %62 = vector.load %arg18[%c0_46, %c0_47] : memref<1x256xf32, #tpu.memory_space<vmem>>, vector<1x256xf32>
    %63 = vector.broadcast %62 : vector<1x256xf32> to vector<16x256xf32>
    %64 = arith.addf %61, %63 : vector<16x256xf32>
    %cst_48 = arith.constant 0.000000e+00 : f32
    %65 = vector.broadcast %cst_48 : f32 to vector<16x256xf32>
    %66 = arith.maximumf %64, %65 : vector<16x256xf32>
    %67 = arith.truncf %66 : vector<16x256xf32> to vector<16x256xbf16>
    %c0_49 = arith.constant 0 : index
    %c0_50 = arith.constant 0 : index
    %68 = vector.load %arg19[%c0_49, %c0_50] : memref<256x256xbf16, #tpu.memory_space<vmem>>, vector<256x256xbf16>
    %cst_51 = arith.constant dense<0.000000e+00> : vector<16x256xf32>
    %69 = tpu.matmul %67, %68, %cst_51 {dimension_numbers = #tpu.dot_dimension_numbers<[1], [0], [0], [1], [0, 0, 1, 1], [], []>} : vector<16x256xbf16>, vector<256x256xbf16>, vector<16x256xf32> -> vector<16x256xf32>
    %c0_52 = arith.constant 0 : index
    %c0_53 = arith.constant 0 : index
    %70 = vector.load %arg20[%c0_52, %c0_53] : memref<1x256xf32, #tpu.memory_space<vmem>>, vector<1x256xf32>
    %71 = vector.broadcast %70 : vector<1x256xf32> to vector<16x256xf32>
    %72 = arith.addf %69, %71 : vector<16x256xf32>
    %cst_54 = arith.constant 0.000000e+00 : f32
    %73 = vector.broadcast %cst_54 : f32 to vector<16x256xf32>
    %74 = arith.maximumf %72, %73 : vector<16x256xf32>
    %75 = arith.truncf %74 : vector<16x256xf32> to vector<16x256xbf16>
    %c0_55 = arith.constant 0 : index
    %c0_56 = arith.constant 0 : index
    %76 = vector.load %arg21[%c0_55, %c0_56] : memref<256x32xbf16, #tpu.memory_space<vmem>>, vector<256x32xbf16>
    %cst_57 = arith.constant dense<0.000000e+00> : vector<16x32xf32>
    %77 = tpu.matmul %75, %76, %cst_57 {dimension_numbers = #tpu.dot_dimension_numbers<[1], [0], [0], [1], [0, 0, 1, 1], [], []>} : vector<16x256xbf16>, vector<256x32xbf16>, vector<16x32xf32> -> vector<16x32xf32>
    %c0_58 = arith.constant 0 : index
    %c0_59 = arith.constant 0 : index
    %78 = vector.load %arg22[%c0_58, %c0_59] : memref<1x32xf32, #tpu.memory_space<vmem>>, vector<1x32xf32>
    %79 = vector.broadcast %78 : vector<1x32xf32> to vector<16x32xf32>
    %80 = arith.addf %77, %79 : vector<16x32xf32>
    %81 = vector.extract_strided_slice %22 {offsets = [1, 0], sizes = [15, 32], strides = [1, 1]} : vector<16x32xf32> to vector<15x32xf32>
    %cst_60 = arith.constant 0.000000e+00 : f32
    %82 = vector.broadcast %cst_60 : f32 to vector<1x32xf32>
    %83 = tpu.concatenate %81, %82 in 0 : vector<15x32xf32>, vector<1x32xf32> -> vector<16x32xf32>
    %c0_61 = arith.constant 0 : index
    %c0_62 = arith.constant 0 : index
    %84 = vector.load %arg23[%c0_61, %c0_62] : memref<1x32xf32, #tpu.memory_space<vmem>>, vector<1x32xf32>
    %85 = vector.broadcast %84 : vector<1x32xf32> to vector<16x32xf32>
    %86 = arith.mulf %83, %85 : vector<16x32xf32>
    %87 = arith.addf %86, %80 : vector<16x32xf32>
    %cst_63 = arith.constant 0.000000e+00 : f32
    %88 = vector.broadcast %cst_63 : f32 to vector<16x48xf32>
    %89 = tpu.concatenate %44, %22, %87, %88 in 1 : vector<16x16xf32>, vector<16x32xf32>, vector<16x32xf32>, vector<16x48xf32> -> vector<16x128xf32>
    %c0_64 = arith.constant 0 : index
    %c0_65 = arith.constant 0 : index
    %90 = vector.load %arg24[%c0_64, %c0_65] : memref<16x128xf32, #tpu.memory_space<vmem>>, vector<16x128xf32>
    tpu.vector_store %arg24[%c0_64, %c0_65], %89 {strides = array<i32>} : memref<16x128xf32, #tpu.memory_space<vmem>>, vector<16x128xf32>,
    return
  }
  func.func @transform_0(%arg0: i32) -> (i32, i32) {
    %c0_i32 = arith.constant 0 : i32
    %c0_i32_0 = arith.constant 0 : i32
    return %arg0, %c0_i32 : i32, i32
  }
  func.func @transform_1(%arg0: i32) -> (i32, i32) {
    %c0_i32 = arith.constant 0 : i32
    %c0_i32_0 = arith.constant 0 : i32
    return %arg0, %c0_i32 : i32, i32
  }
  func.func @transform_2(%arg0: i32) -> (i32, i32) {
    %c0_i32 = arith.constant 0 : i32
    %c0_i32_0 = arith.constant 0 : i32
    %c0_i32_1 = arith.constant 0 : i32
    return %c0_i32, %c0_i32_0 : i32, i32
  }
  func.func @transform_3(%arg0: i32) -> (i32, i32) {
    %c0_i32 = arith.constant 0 : i32
    %c0_i32_0 = arith.constant 0 : i32
    %c0_i32_1 = arith.constant 0 : i32
    return %c0_i32, %c0_i32_0 : i32, i32
  }
  func.func @transform_4(%arg0: i32) -> (i32, i32) {
    %c0_i32 = arith.constant 0 : i32
    %c0_i32_0 = arith.constant 0 : i32
    %c0_i32_1 = arith.constant 0 : i32
    return %c0_i32, %c0_i32_0 : i32, i32
  }
  func.func @transform_5(%arg0: i32) -> (i32, i32) {
    %c0_i32 = arith.constant 0 : i32
    %c0_i32_0 = arith.constant 0 : i32
    %c0_i32_1 = arith.constant 0 : i32
    return %c0_i32, %c0_i32_0 : i32, i32
  }
  func.func @transform_6(%arg0: i32) -> (i32, i32) {
    %c0_i32 = arith.constant 0 : i32
    %c0_i32_0 = arith.constant 0 : i32
    %c0_i32_1 = arith.constant 0 : i32
    return %c0_i32, %c0_i32_0 : i32, i32
  }
  func.func @transform_7(%arg0: i32) -> (i32, i32) {
    %c0_i32 = arith.constant 0 : i32
    %c0_i32_0 = arith.constant 0 : i32
    %c0_i32_1 = arith.constant 0 : i32
    return %c0_i32, %c0_i32_0 : i32, i32
  }
  func.func @transform_8(%arg0: i32) -> (i32, i32) {
    %c0_i32 = arith.constant 0 : i32
    %c0_i32_0 = arith.constant 0 : i32
    %c0_i32_1 = arith.constant 0 : i32
    return %c0_i32, %c0_i32_0 : i32, i32
  }
  func.func @transform_9(%arg0: i32) -> (i32, i32) {
    %c0_i32 = arith.constant 0 : i32
    %c0_i32_0 = arith.constant 0 : i32
    %c0_i32_1 = arith.constant 0 : i32
    return %c0_i32, %c0_i32_0 : i32, i32
  }
  func.func @transform_10(%arg0: i32) -> (i32, i32) {
    %c0_i32 = arith.constant 0 : i32
    %c0_i32_0 = arith.constant 0 : i32
    %c0_i32_1 = arith.constant 0 : i32
    return %c0_i32, %c0_i32_0 : i32, i32
  }
  func.func @transform_11(%arg0: i32) -> (i32, i32) {
    %c0_i32 = arith.constant 0 : i32
    %c0_i32_0 = arith.constant 0 : i32
    %c0_i32_1 = arith.constant 0 : i32
    return %c0_i32, %c0_i32_0 : i32, i32
  }
  func.func @transform_12(%arg0: i32) -> (i32, i32) {
    %c0_i32 = arith.constant 0 : i32
    %c0_i32_0 = arith.constant 0 : i32
    %c0_i32_1 = arith.constant 0 : i32
    return %c0_i32, %c0_i32_0 : i32, i32
  }
  func.func @transform_13(%arg0: i32) -> (i32, i32) {
    %c0_i32 = arith.constant 0 : i32
    %c0_i32_0 = arith.constant 0 : i32
    %c0_i32_1 = arith.constant 0 : i32
    return %c0_i32, %c0_i32_0 : i32, i32
  }
  func.func @transform_14(%arg0: i32) -> (i32, i32) {
    %c0_i32 = arith.constant 0 : i32
    %c0_i32_0 = arith.constant 0 : i32
    %c0_i32_1 = arith.constant 0 : i32
    return %c0_i32, %c0_i32_0 : i32, i32
  }
  func.func @transform_15(%arg0: i32) -> (i32, i32) {
    %c0_i32 = arith.constant 0 : i32
    %c0_i32_0 = arith.constant 0 : i32
    %c0_i32_1 = arith.constant 0 : i32
    return %c0_i32, %c0_i32_0 : i32, i32
  }
  func.func @transform_16(%arg0: i32) -> (i32, i32) {
    %c0_i32 = arith.constant 0 : i32
    %c0_i32_0 = arith.constant 0 : i32
    %c0_i32_1 = arith.constant 0 : i32
    return %c0_i32, %c0_i32_0 : i32, i32
  }
  func.func @transform_17(%arg0: i32) -> (i32, i32) {
    %c0_i32 = arith.constant 0 : i32
    %c0_i32_0 = arith.constant 0 : i32
    %c0_i32_1 = arith.constant 0 : i32
    return %c0_i32, %c0_i32_0 : i32, i32
  }
  func.func @transform_18(%arg0: i32) -> (i32, i32) {
    %c0_i32 = arith.constant 0 : i32
    %c0_i32_0 = arith.constant 0 : i32
    %c0_i32_1 = arith.constant 0 : i32
    return %c0_i32, %c0_i32_0 : i32, i32
  }
  func.func @transform_19(%arg0: i32) -> (i32, i32) {
    %c0_i32 = arith.constant 0 : i32
    %c0_i32_0 = arith.constant 0 : i32
    %c0_i32_1 = arith.constant 0 : i32
    return %c0_i32, %c0_i32_0 : i32, i32
  }
  func.func @transform_20(%arg0: i32) -> (i32, i32) {
    %c0_i32 = arith.constant 0 : i32
    %c0_i32_0 = arith.constant 0 : i32
    %c0_i32_1 = arith.constant 0 : i32
    return %c0_i32, %c0_i32_0 : i32, i32
  }
  func.func @transform_21(%arg0: i32) -> (i32, i32) {
    %c0_i32 = arith.constant 0 : i32
    %c0_i32_0 = arith.constant 0 : i32
    %c0_i32_1 = arith.constant 0 : i32
    return %c0_i32, %c0_i32_0 : i32, i32
  }
  func.func @transform_22(%arg0: i32) -> (i32, i32) {
    %c0_i32 = arith.constant 0 : i32
    %c0_i32_0 = arith.constant 0 : i32
    %c0_i32_1 = arith.constant 0 : i32
    return %c0_i32, %c0_i32_0 : i32, i32
  }
  func.func @transform_23(%arg0: i32) -> (i32, i32) {
    %c0_i32 = arith.constant 0 : i32
    %c0_i32_0 = arith.constant 0 : i32
    return %arg0, %c0_i32 : i32, i32
  }
}

</mosaic_0001>

<bundles_post_ra>
// kernel: koopman_autoencoder_pretrain_forward.1
= control target key start
LH: loop header
LB: loop body
LE: loop exit
PB: predicated region body
PF: predicated region fallthrough
CT: control target
= control target key end

     0   :  { %v1474_v0 = vmov 0.0   ;;  %vm1475_vm0 = vmmov 0   ;;  %vm93_vm1 = vcmask 130048   ;;  %vm164_vm2 = vcmask 261120   ;;  %s1900_s2 = inlined_call_operand.vmem [shape: bf16[16,32], index: 2, kind: input, shape index: {}]   ;;  %s1901_s0 = inlined_call_operand.vmem [shape: f32[16,16], index: 0, kind: input, shape index: {}]   ;;  %s1902_s4 = inlined_call_operand.vmem [shape: bf16[32,32], index: 4, kind: input, shape index: {}]   ;;  %s1903_s3 = inlined_call_operand.vmem [shape: f32[1,32], index: 3, kind: input, shape index: {}]   ;;  %s1904_s6 = inlined_call_operand.vmem [shape: bf16[32,32], index: 6, kind: input, shape index: {}]   ;;  %s1905_s5 = inlined_call_operand.vmem [shape: f32[1,32], index: 5, kind: input, shape index: {}]   ;;  %s1906_s8 = inlined_call_operand.vmem [shape: bf16[32,32], index: 8, kind: input, shape index: {}]   ;;  %s1907_s7 = inlined_call_operand.vmem [shape: f32[1,32], index: 7, kind: input, shape index: {}]   ;;  %s1908_s10 = inlined_call_operand.vmem [shape: bf16[32,32], index: 10, kind: input, shape index: {}]   ;;  %s1909_s9 = inlined_call_operand.vmem [shape: f32[1,32], index: 9, kind: input, shape index: {}]   ;;  %s1910_s16 = inlined_call_operand.vmem [shape: bf16[16,256], index: 16, kind: input, shape index: {}]   ;;  %s1911_s12 = inlined_call_operand.vmem [shape: bf16[32,16], index: 12, kind: input, shape index: {}]   ;;  %s1912_s1 = inlined_call_operand.vmem [shape: f32[2,16], index: 1, kind: input, shape index: {}]   ;;  %s1913_s14 = inlined_call_operand.vmem [shape: bf16[16,256], index: 14, kind: input, shape index: {}]   ;;  %s1914_s15 = inlined_call_operand.vmem [shape: bf16[16,256], index: 15, kind: input, shape index: {}]   ;;  %s1915_s18 = inlined_call_operand.vmem [shape: bf16[256,256], index: 18, kind: input, shape index: {}]   ;;  %s1916_s11 = inlined_call_operand.vmem [shape: f32[1,32], index: 11, kind: input, shape index: {}]   ;;  %s1917_s20 = inlined_call_operand.vmem [shape: bf16[256,32], index: 20, kind: input, shape index: {}]   ;;  %s1918_s17 = inlined_call_operand.vmem [shape: f32[1,256], index: 17, kind: input, shape index: {}]   ;;  %s1919_s19 = inlined_call_operand.vmem [shape: f32[1,256], index: 19, kind: input, shape index: {}]   ;;  %s1920_s21 = inlined_call_operand.vmem [shape: f32[1,32], index: 21, kind: input, shape index: {}]   ;;  %s1921_s22 = inlined_call_operand.vmem [shape: f32[1,32], index: 22, kind: input, shape index: {}]   ;;  %s1922_s13 = inlined_call_operand.vmem [shape: f32[1,16], index: 13, kind: input, shape index: {}]   ;;  %s1923_s23 = inlined_call_operand.vmem [shape: f32[16,128], index: 23, kind: output, shape index: {}]  }
   0x1   :  { %1928 = sst [smem:[#allocation2_spill]] %s1900_s2  ;;  %1338 = vmatprep.subr.bf16.mxu0 %v1474_v0  ;;  %1340 = vmatprep.mubr.msk.bf16.mxu0 %vm1475_vm0, %v1474_v0  ;;  %vm1171_vm3 = vcmask 1046528   ;;  %v1397_v42 = vld [vmem:[%s1908_s10 + $0x8] sm:$0xff]   ;;  %v1398_v43 = vld [vmem:[%s1908_s10] sm:$0xff]   ;;  %v1477_v58 = vmov 0   ;;  %vm494_vm4 = vcmask 1047552  }
   0x2   :  { %1929 = sst [smem:[#allocation3_spill]] %s1901_s0  ;;  %1376 = vmatprep.subr.bf16.mxu1 %v1474_v0  ;;  %1380 = vmatprep.mubr.msk.bf16.mxu1 %vm1475_vm0, %v1474_v0  ;;  %v1228_v44 = vld [vmem:[%s1909_s9] ss:$0 sm:$0xff]  ;;  %v1401_v54 = vld [vmem:[%s1910_s16 + $0x4] ss:$8 sps:$4 sm:$0xff]   ;;  %vm1205_vm7 = vcmask 392192  }
   0x3   :  { %1930 = sst [smem:[#allocation4_spill]] %s1902_s4  ;;  %v1399_v55 = vld [vmem:[%s1910_s16] ss:$8 sps:$4 sm:$0xff]   ;;  %v1406_v61 = vld [vmem:[%s1913_s14 + $0x4] ss:$8 sps:$4 sm:$0xff]   ;;  %vm1208_vm8 = vcmask 654336  }
   0x4   :  { %1931 = sst [smem:[#allocation5_spill]] %s1903_s3  ;;  %v1402_v56 = vld [vmem:[%s1911_s12 + $0x8] sm:$0xff]   ;;  %v498_v57 = vld [vmem:[%s1912_s1] sm:$0x3]  ;;  %vm495_vm5 = vsmask.f32 7424 }
   0x5   :  { %1932 = sst [smem:[#allocation6_spill]] %s1904_s6  ;;  %1377 = vmatpush3.bf16.msra.mxu1 %v1402_v56  ;;  %v499_v59 = vpack.c.bf16 %v498_v57, %v498_v57  ;;  %v1403_v60 = vld [vmem:[%s1911_s12] sm:$0xff]   ;;  %vm496_vm6 = vmand %vm494_vm4, %vm495_vm5  ;;  %v1458_v56 = vld [vmem:[%s1917_s20 + $0x78] sm:$0xff]  }
   0x6   :  { %1933 = sst [smem:[#allocation7_spill]] %s1905_s5  ;;  %1378 = vmatprep.subr.bf16.mxu1 %v1474_v0  ;;  %v1404_v62 = vld [vmem:[%s1913_s14] ss:$8 sps:$4 sm:$0xff]   ;;  %v1409_v63 = vld [vmem:[%s1914_s15 + $0x4] ss:$8 sps:$4 sm:$0xff]   ;;  %v1459_v57 = vld [vmem:[%s1917_s20 + $0x38] sm:$0xff]  }
   0x7   :  { %1934 = sst [smem:[#allocation8_spill]] %s1906_s8 }
   0x8   :  { %1935 = sst [smem:[#allocation9_spill]] %s1907_s7 }
   0x9   :  { %s1936_s24 = sld [smem:[#allocation2_spill]]  ;;  %1379 = vmatpush3.bf16.msra.mxu1 %v1403_v60  ;;  %v1462_v60 = vld [vmem:[%s1917_s20 + $0x68] sm:$0xff]  }
   0xa   :  { %s1937_s0 = sld [smem:[#allocation3_spill]]  ;;  %632 = vmatprep.subr.bf16.mxu1 %v1409_v63  ;;  %v1465_v63 = vld [vmem:[%s1917_s20 + $0x20] sm:$0xff]  }
   0xb   :  { %s1938_s7 = sld [smem:[#allocation4_spill]] }
   0xc   :  { %s1939_s6 = sld [smem:[#allocation5_spill]] }
   0xd   :  { %s1940_s25 = sld [smem:[#allocation6_spill]] }
   0xe   :  { %s1941_s8 = sld [smem:[#allocation7_spill]] }
   0xf   :  { %v1390_v1 = vld [vmem:[%s1936_s24] sm:$0xff]   ;;  %s1942_s28 = sld [smem:[#allocation8_spill]]  ;;  %s1476_s24 = smov 16  }
  0x10   :  { %v75_v2 = vld [vmem:[%s1937_s0] sm:$0xff]  ;;  %v76_v3 = vld [vmem:[%s1937_s0 + $0x8] sm:$0xff]  ;;  %1339 = vmatpush3.bf16.msra.mxu0 %v1390_v1  ;;  %s1943_s30 = sld [smem:[#allocation9_spill]] }
  0x11   :  { %v1615_v4 = vpack.c.bf16 %v76_v3, %v75_v2  ;;  %1344 = vmatprep.subr.bf16.mxu0 %v1474_v0  ;;  %v1391_v5 = vld [vmem:[%s1938_s7 + $0x8] sm:$0xff]   ;;  %v1392_v6 = vld [vmem:[%s1938_s7] sm:$0xff]  }
  0x12   :  { %v1217_v7 = vld [vmem:[%s1939_s6] ss:$0 sm:$0xff] }
  0x13   :  { %1341 = vmatmul.mubr.msk.bf16.vlgmr.msra.gmra.mxu0 %vm93_vm1, %v1615_v4  ;;  %v1393_v17 = vld [vmem:[%s1940_s25 + $0x8] sm:$0xff]   ;;  %v1394_v18 = vld [vmem:[%s1940_s25] sm:$0xff]  }
  0x14   :  { %1348 = vmatprep.mubr.msk.bf16.mxu0 %vm1475_vm0, %v1474_v0  ;;  %1345 = vmatpush3.bf16.msra.mxu0 %v1391_v5  ;;  %v1220_v19 = vld [vmem:[%s1941_s8] ss:$0 sm:$0xff] }
  0x15   :  { %1346 = vmatprep.subr.bf16.mxu0 %v1474_v0  ;;  %v1395_v29 = vld [vmem:[%s1942_s28 + $0x8] sm:$0xff]   ;;  %v1396_v30 = vld [vmem:[%s1942_s28] sm:$0xff]  }
  0x16   :  { %v1224_v31 = vld [vmem:[%s1943_s30] ss:$0 sm:$0xff] }
  0x18   :  { %1347 = vmatpush3.bf16.msra.mxu0 %v1392_v6  ;;  %v489_v6 = vshll.u32 %v1615_v4, 16 }
  0x19   :  { %1352 = vmatprep.subr.bf16.mxu0 %v1474_v0 }
  0xd3   :  { %v131_v8 = vpop.f32.mrf.mxu0 }
  0xd4   :  { %v132_v10 = vadd.f32 %v1217_v7, %v131_v8 }
  0xd5   :  { %v1342_v9 = vpop.f32.mrf.mxu0 }
  0xd6   :  { %v138_v14 = vmax.f32 %v132_v10, 0.0 }
  0xd7   :  { %v134_v11 = vpop.f32.mrf.mxu0 }
  0xd8   :  { %v135_v12 = vadd.f32 %v1217_v7, %v134_v11  ;;  %v1407_v11 = vld [vmem:[%s1914_s15] ss:$8 sps:$4 sm:$0xff]  }
  0xd9   :  { %v1343_v13 = vpop.f32.mrf.mxu0 }
  0xda   :  { %v139_v15 = vmax.f32 %v135_v12, 0.0  ;;  %v487_v12 = vshrl.u32 %v1615_v4, 16  ;;  %v491_v13 = vrot.slane %v489_v6, 1 }
  0xdc   :  { %v140_v16 = vpack.c.bf16 %v139_v15, %v138_v14  ;;  %v1412_v15 = vld [vmem:[%s1915_s18 + $0x74] ss:$8 sps:$4 sm:$0xff]  }
  0xde   :  { %1349 = vmatmul.mubr.msk.bf16.vlgmr.msra.gmra.mxu0 %vm164_vm2, %v140_v16  ;;  %v492_v16 = vor.u32 %v491_v13, %v487_v12 }
  0xdf   :  { %1356 = vmatprep.mubr.msk.bf16.mxu0 %vm1475_vm0, %v1474_v0  ;;  %1353 = vmatpush3.bf16.msra.mxu0 %v1393_v17 }
  0xe0   :  { %1354 = vmatprep.subr.bf16.mxu0 %v1474_v0  ;;  %v497_v17 = vsel %vm496_vm6, %v492_v16, 0 }
  0xe3   :  { %1355 = vmatpush3.bf16.msra.mxu0 %v1394_v18  ;;  %v1415_v18 = vld [vmem:[%s1915_s18 + $0x64] ss:$8 sps:$4 sm:$0xff]  }
  0xe4   :  { %1360 = vmatprep.subr.bf16.mxu0 %v1474_v0 }
 0x19e   :  { %v202_v20 = vpop.f32.mrf.mxu0 }
 0x19f   :  { %v203_v22 = vadd.f32 %v1220_v19, %v202_v20  ;;  %v1418_v20 = vld [vmem:[%s1915_s18 + $0x54] ss:$8 sps:$4 sm:$0xff]  }
 0x1a0   :  { %v1350_v21 = vpop.f32.mrf.mxu0 }
 0x1a1   :  { %v209_v26 = vmax.f32 %v203_v22, 0.0  ;;  %v1416_v21 = vld [vmem:[%s1915_s18 + $0x50] ss:$8 sps:$4 sm:$0xff]   ;;  %v1421_v22 = vld [vmem:[%s1915_s18 + $0x44] ss:$8 sps:$4 sm:$0xff]  }
 0x1a2   :  { %v205_v23 = vpop.f32.mrf.mxu0 }
 0x1a3   :  { %v206_v24 = vadd.f32 %v1220_v19, %v205_v23  ;;  %v1413_v19 = vld [vmem:[%s1915_s18 + $0x60] ss:$8 sps:$4 sm:$0xff]  }
 0x1a4   :  { %v1351_v25 = vpop.f32.mrf.mxu0  ;;  %v1419_v23 = vld [vmem:[%s1915_s18 + $0x40] ss:$8 sps:$4 sm:$0xff]  }
 0x1a5   :  { %v210_v27 = vmax.f32 %v206_v24, 0.0  ;;  %v1424_v24 = vld [vmem:[%s1915_s18 + $0x34] ss:$8 sps:$4 sm:$0xff]   ;;  %v1422_v25 = vld [vmem:[%s1915_s18 + $0x30] ss:$8 sps:$4 sm:$0xff]  }
 0x1a7   :  { %v211_v28 = vpack.c.bf16 %v210_v27, %v209_v26  ;;  %v1427_v26 = vld [vmem:[%s1915_s18 + $0x24] ss:$8 sps:$4 sm:$0xff]   ;;  %v1425_v27 = vld [vmem:[%s1915_s18 + $0x20] ss:$8 sps:$4 sm:$0xff]  }
 0x1a9   :  { %1357 = vmatmul.mubr.msk.bf16.vlgmr.msra.gmra.mxu0 %vm164_vm2, %v211_v28  ;;  %v1430_v28 = vld [vmem:[%s1915_s18 + $0x14] ss:$8 sps:$4 sm:$0xff]  }
 0x1aa   :  { %1364 = vmatprep.mubr.msk.bf16.mxu0 %vm1475_vm0, %v1474_v0  ;;  %1361 = vmatpush3.bf16.msra.mxu0 %v1395_v29  ;;  %v1428_v29 = vld [vmem:[%s1915_s18 + $0x10] ss:$8 sps:$4 sm:$0xff]  }
 0x1ab   :  { %1362 = vmatprep.subr.bf16.mxu0 %v1474_v0 }
 0x1ae   :  { %1363 = vmatpush3.bf16.msra.mxu0 %v1396_v30  ;;  %v1433_v30 = vld [vmem:[%s1915_s18 + $0x4] ss:$8 sps:$4 sm:$0xff]  }
 0x1af   :  { %1368 = vmatprep.subr.bf16.mxu0 %v1474_v0 }
 0x269   :  { %v272_v32 = vpop.f32.mrf.mxu0 }
 0x26a   :  { %v273_v33 = vadd.f32 %v1224_v31, %v272_v32  ;;  %v1436_v32 = vld [vmem:[%s1915_s18 + $0xf4] ss:$8 sps:$4 sm:$0xff]  }
 0x26b   :  { %v1358_v34 = vpop.f32.mrf.mxu0 }
 0x26c   :  { %1189 = vrot.lane.b32.xlu0 %v273_v33, %s1476_s24  ;;  %v1172_v38 = vrot.slane %v273_v33, 1  ;;  %v1439_v34 = vld [vmem:[%s1915_s18 + $0xe4] ss:$8 sps:$4 sm:$0xff]  }
 0x26d   :  { %v275_v35 = vpop.f32.mrf.mxu0 }
 0x26e   :  { %v1661_v36 = vadd.f32 %v1224_v31, %v275_v35  ;;  %v1431_v31 = vld [vmem:[%s1915_s18] ss:$8 sps:$4 sm:$0xff]  }
 0x26f   :  { %v1359_v37 = vpop.f32.mrf.mxu0  ;;  %v1437_v35 = vld [vmem:[%s1915_s18 + $0xe0] ss:$8 sps:$4 sm:$0xff]  }
 0x270   :  { %v279_v39 = vpack.c.bf16 %v1661_v36, %v273_v33  ;;  %v1173_v40 = vrot.slane %v1661_v36, 1  ;;  %1191 = vrot.lane.b32.xlu0 %v1661_v36, %s1476_s24  ;;  %v1434_v33 = vld [vmem:[%s1915_s18 + $0xf0] ss:$8 sps:$4 sm:$0xff]  }
 0x272   :  { %1365 = vmatmul.mubr.msk.bf16.vlgmr.msra.gmra.mxu0 %vm164_vm2, %v279_v39  ;;  %v1670_v41 = vsel %vm1171_vm3, %v1172_v38, %v1173_v40 }
 0x273   :  { %1372 = vmatprep.mubr.msk.bf16.mxu0 %vm1475_vm0, %v1474_v0  ;;  %1369 = vmatpush3.bf16.msra.mxu0 %v1397_v42 }
 0x274   :  { %1370 = vmatprep.subr.bf16.mxu0 %v1474_v0  ;;  %v1232_v0 = vld [vmem:[%s1916_s11] ss:$0 sm:$0xff] }
 0x277   :  { %1371 = vmatpush3.bf16.msra.mxu0 %v1398_v43  ;;  %v1442_v43 = vld [vmem:[%s1915_s18 + $0xd4] ss:$8 sps:$4 sm:$0xff]  }
 0x278   :  { %529 = vmatprep.subr.bf16.mxu0 %v1401_v54  ;;  %v1457_v54 = vld [vmem:[%s1915_s18 + $0x84] ss:$8 sps:$4 sm:$0xff]  }
 0x332   :  { %v340_v45 = vpop.f32.mrf.mxu0 }
 0x333   :  { %v341_v47 = vadd.f32 %v1228_v44, %v340_v45  ;;  %v1440_v45 = vld [vmem:[%s1915_s18 + $0xd0] ss:$8 sps:$4 sm:$0xff]  }
 0x334   :  { %v1366_v46 = vpop.f32.mrf.mxu0 }
 0x335   :  { %v347_v51 = vmax.f32 %v341_v47, 0.0  ;;  %v1445_v46 = vld [vmem:[%s1915_s18 + $0xc4] ss:$8 sps:$4 sm:$0xff]   ;;  %v1443_v47 = vld [vmem:[%s1915_s18 + $0xc0] ss:$8 sps:$4 sm:$0xff]  }
 0x336   :  { %v343_v48 = vpop.f32.mrf.mxu0 }
 0x337   :  { %v344_v49 = vadd.f32 %v1228_v44, %v343_v48  ;;  %v1448_v48 = vld [vmem:[%s1915_s18 + $0xb4] ss:$8 sps:$4 sm:$0xff]  }
 0x338   :  { %v1367_v50 = vpop.f32.mrf.mxu0 }
 0x339   :  { %v348_v52 = vmax.f32 %v344_v49, 0.0  ;;  %v1446_v49 = vld [vmem:[%s1915_s18 + $0xb0] ss:$8 sps:$4 sm:$0xff]   ;;  %v1451_v50 = vld [vmem:[%s1915_s18 + $0xa4] ss:$8 sps:$4 sm:$0xff]  }
 0x33b   :  { %v349_v53 = vpack.c.bf16 %v348_v52, %v347_v51  ;;  %v1449_v51 = vld [vmem:[%s1915_s18 + $0xa0] ss:$8 sps:$4 sm:$0xff]   ;;  %v1454_v52 = vld [vmem:[%s1915_s18 + $0x94] ss:$8 sps:$4 sm:$0xff]  }
 0x33d   :  { %1373 = vmatmul.mubr.msk.bf16.vlgmr.msra.gmra.mxu0 %vm164_vm2, %v349_v53  ;;  %v1452_v53 = vld [vmem:[%s1915_s18 + $0x90] ss:$8 sps:$4 sm:$0xff]  }
 0x33e   :  { %530 = vmatpush1.bf16.msra.mxu0 %v1399_v55  ;;  %547 = vmatprep.mubr.bf16.mxu0 %v1477_v58  ;;  %v1455_v55 = vld [vmem:[%s1915_s18 + $0x80] ss:$8 sps:$4 sm:$0xff]  }
 0x33f   :  { %685 = vmatprep.subr.bf16.mxu0 %v1406_v61  ;;  %v1463_v61 = vld [vmem:[%s1917_s20 + $0x28] sm:$0xff]  }
 0x345   :  { %1242 = vmatmul.mubr.msk.bf16.vlgmr.msra.gmra.mxu0 %vm93_vm1, %v499_v59  ;;  %v1461_v59 = vld [vmem:[%s1917_s20 + $0x30] sm:$0xff]  }
 0x346   :  { %703 = vmatprep.mubr.bf16.mxu0 %v1477_v58  ;;  %686 = vmatpush1.bf16.msra.mxu0 %v1404_v62  ;;  %v1464_v62 = vld [vmem:[%s1917_s20 + $0x60] sm:$0xff]  }
 0x347   :  { %1316 = vmatprep.subr.bf16.mxu0 %v1458_v56  ;;  %v1470_v56 = vld [vmem:[%s1917_s20 + $0x48] sm:$0xff]  }
 0x34d   :  { %1248 = vmatmul.mubr.msk.bf16.vlgmr.msra.gmra.mxu0 %vm93_vm1, %v1615_v4  ;;  %v1410_v4 = vld [vmem:[%s1915_s18 + $0x70] ss:$8 sps:$4 sm:$0xff]  }
 0x34e   :  { %1317 = vmatpush3.bf16.msra.mxu0 %v1459_v57  ;;  %v1471_v57 = vld [vmem:[%s1917_s20 + $0x8] sm:$0xff]  }
 0x3fd   :  { %v410_v1 = vpop.f32.mrf.mxu0 }
 0x3fe   :  { %v411_v3 = vadd.f32 %v1232_v0, %v410_v1  ;;  %v1467_v1 = vld [vmem:[%s1917_s20 + $0x18] sm:$0xff]  }
 0x3ff   :  { %v1374_v2 = vpop.f32.mrf.mxu0 }
 0x400   :  { %v417_v9 = vmax.f32 %v411_v3, 0.0  ;;  %v1478_v2 = vmov 1966171168  }
 0x401   :  { %v413_v5 = vpop.f32.mrf.mxu0  ;;  %v560_v3 = vunpack.c.l.s4 %v1478_v2 }
 0x402   :  { %v414_v7 = vadd.f32 %v1232_v0, %v413_v5  ;;  %v1466_v0 = vld [vmem:[%s1917_s20 + $0x58] sm:$0xff]   ;;  %v562_v5 = vlaneseq }
 0x403   :  { %v1375_v8 = vpop.f32.mrf.mxu0  ;;  %v561_v6 = vunpack.c.0.s8 %v560_v3 }
 0x404   :  { %v418_v10 = vmax.f32 %v414_v7, 0.0  ;;  %v563_v7 = vshrl.u32 %v562_v5, 7 }
 0x405   :  { %v549_v37 = vpop.f32.mrf.mxu0 }
 0x406   :  { %v419_v14 = vpack.c.bf16 %v418_v10, %v417_v9  ;;  %v564_v8 = vsub.s32 %v561_v6, %v563_v7 }
 0x407   :  { %v551_v38 = vpop.f32.mrf.mxu0 }
 0x408   :  { %1381 = vmatmul.mubr.msk.bf16.vlgmr.msra.gmra.mxu1 %vm164_vm2, %v419_v14  ;;  %v558_v39 = vcombine.low %v549_v37, %v551_v38 }
 0x409   :  { %633 = vmatpush1.bf16.msra.mxu1 %v1407_v11  ;;  %650 = vmatprep.mubr.bf16.mxu1 %v1477_v58  ;;  %v553_v42 = vpop.f32.mrf.mxu0  ;;  %v1460_v58 = vld [vmem:[%s1917_s20 + $0x70] sm:$0xff]  }
 0x40a   :  { %944 = vmatprep.subr.bf16.mxu1 %v1412_v15  ;;  %1318 = vmatprep.subr.bf16.mxu0 %v1460_v58  ;;  %v565_v10 = vrot.slane %v558_v39, %v564_v8  ;;  %v1472_v58 = vld [vmem:[%s1917_s20 + $0x40] sm:$0xff]  }
 0x40b   :  { %v554_v44 = vpop.f32.mrf.mxu0  ;;  %1319 = vmatpush3.bf16.msra.mxu0 %v1461_v59  ;;  %v1473_v59 = vld [vmem:[%s1917_s20] sm:$0xff]  }
 0x40c   :  { %1320 = vmatprep.subr.bf16.mxu0 %v1462_v60  ;;  %v566_v14 = vcombine.high %v565_v10, %v565_v10  ;;  %v772_v60 = vld [vmem:[%s1919_s19] sm:$0x3] }
 0x40d   :  { %v705_v12 = vpop.f32.mrf.mxu0 }
 0x40f   :  { %1321 = vmatpush3.bf16.msra.mxu0 %v1463_v61  ;;  %v707_v15 = vpop.f32.mrf.mxu0 }
 0x410   :  { %1245 = vmatmul.mubr.msk.bf16.vlgmr.msra.gmra.mxu1 %vm93_vm1, %v497_v17  ;;  %1322 = vmatprep.subr.bf16.mxu0 %v1464_v62  ;;  %v573_v17 = vrot.slane %v565_v10, %v564_v8 }
 0x411   :  { %945 = vmatpush1.bf16.msra.mxu1 %v1410_v4  ;;  %v587_v4 = vsub.s32 1, %v563_v7 }
 0x412   :  { %946 = vmatprep.subr.bf16.mxu1 %v1415_v18  ;;  %v583_v18 = vsub.s32 0, %v563_v7 }
 0x413   :  { %1323 = vmatpush3.bf16.msra.mxu0 %v1465_v63  ;;  %v781_v62 = vrot.slane %v772_v60, %v587_v4 }
 0x414   :  { %1324 = vmatprep.subr.bf16.mxu0 %v1466_v0  ;;  %v777_v63 = vrot.slane %v772_v60, %v583_v18 }
 0x415   :  { %947 = vmatpush1.bf16.msra.mxu1 %v1413_v19 }
 0x416   :  { %948 = vmatprep.subr.bf16.mxu1 %v1418_v20  ;;  %v580_v20 = vrot.slane %v566_v14, %v564_v8 }
 0x417   :  { %1325 = vmatpush3.bf16.msra.mxu0 %v1467_v1 }
 0x418   :  { %v596_v39 = vrot.slane %v580_v20, %v587_v4 }
 0x419   :  { %949 = vmatpush1.bf16.msra.mxu1 %v1416_v21  ;;  %v709_v21 = vpop.f32.mrf.mxu0 }
 0x41a   :  { %950 = vmatprep.subr.bf16.mxu1 %v1421_v22 }
 0x41d   :  { %951 = vmatpush1.bf16.msra.mxu1 %v1419_v23 }
 0x41e   :  { %952 = vmatprep.subr.bf16.mxu1 %v1424_v24  ;;  %v718_v24 = vld [vmem:[%s1918_s17] sm:$0x3] }
 0x421   :  { %953 = vmatpush1.bf16.msra.mxu1 %v1422_v25  ;;  %v588_v25 = vrot.slane %v573_v17, %v587_v4 }
 0x422   :  { %954 = vmatprep.subr.bf16.mxu1 %v1427_v26 }
 0x425   :  { %955 = vmatpush1.bf16.msra.mxu1 %v1425_v27  ;;  %v584_v27 = vrot.slane %v573_v17, %v583_v18  ;;  %v1281_v17 = vld [vmem:[%s1920_s21] ss:$0 sm:$0xff]  ;;  %s1479_s21 = smov 48  }
 0x426   :  { %956 = vmatprep.subr.bf16.mxu1 %v1430_v28 }
 0x429   :  { %957 = vmatpush1.bf16.msra.mxu1 %v1428_v29 }
 0x42a   :  { %958 = vmatprep.subr.bf16.mxu1 %v1433_v30  ;;  %v727_v30 = vrot.slane %v718_v24, %v587_v4 }
 0x42d   :  { %959 = vmatpush1.bf16.msra.mxu1 %v1431_v31  ;;  %v592_v31 = vrot.slane %v580_v20, %v583_v18 }
 0x42e   :  { %960 = vmatprep.subr.bf16.mxu1 %v1436_v32 }
 0x431   :  { %961 = vmatpush2.bf16.msra.mxu1 %v1434_v33 }
 0x432   :  { %962 = vmatprep.subr.bf16.mxu1 %v1439_v34  ;;  %v723_v34 = vrot.slane %v718_v24, %v583_v18  ;;  %v1298_v18 = vld [vmem:[%s1921_s22] ss:$0 sm:$0xff]  ;;  %v1177_v24 = vsel %vm1171_vm3, %v1173_v40, 0.0 }
 0x435   :  { %963 = vmatpush2.bf16.msra.mxu1 %v1437_v35  ;;  %v711_v35 = vpop.f32.mrf.mxu0 }
 0x436   :  { %964 = vmatprep.subr.bf16.mxu1 %v1442_v43 }
 0x439   :  { %965 = vmatpush2.bf16.msra.mxu1 %v1440_v45 }
 0x43a   :  { %966 = vmatprep.subr.bf16.mxu1 %v1445_v46 }
 0x43d   :  { %967 = vmatpush2.bf16.msra.mxu1 %v1443_v47 }
 0x43e   :  { %968 = vmatprep.subr.bf16.mxu1 %v1448_v48 }
 0x441   :  { %969 = vmatpush2.bf16.msra.mxu1 %v1446_v49 }
 0x442   :  { %970 = vmatprep.subr.bf16.mxu1 %v1451_v50 }
 0x445   :  { %971 = vmatpush2.bf16.msra.mxu1 %v1449_v51 }
 0x446   :  { %972 = vmatprep.subr.bf16.mxu1 %v1454_v52 }
 0x449   :  { %973 = vmatpush2.bf16.msra.mxu1 %v1452_v53 }
 0x44a   :  { %974 = vmatprep.subr.bf16.mxu1 %v1457_v54  ;;  %v1468_v54 = vld [vmem:[%s1917_s20 + $0x50] sm:$0xff]  }
 0x44b   :  { %1326 = vmatprep.subr.bf16.mxu0 %v1468_v54 }
 0x44d   :  { %975 = vmatpush2.bf16.msra.mxu1 %v1455_v55  ;;  %v1469_v55 = vld [vmem:[%s1917_s20 + $0x10] sm:$0xff]  }
 0x44e   :  { %1327 = vmatpush3.bf16.msra.mxu0 %v1469_v55 }
 0x44f   :  { %1328 = vmatprep.subr.bf16.mxu0 %v1470_v56 }
 0x452   :  { %1329 = vmatpush3.bf16.msra.mxu0 %v1471_v57 }
 0x453   :  { %1330 = vmatprep.subr.bf16.mxu0 %v1472_v58 }
 0x456   :  { %1331 = vmatpush3.bf16.msra.mxu0 %v1473_v59 }
 0x4c8   :  { %v1849_v9 = vpop.f32.mrf.mxu1 }
 0x4ca   :  { %v1382_v11 = vpop.f32.mrf.mxu1 }
 0x4cc   :  { %v1851_v13 = vpop.f32.mrf.mxu1 }
 0x4ce   :  { %v1383_v16 = vpop.f32.mrf.mxu1 }
 0x4d0   :  { %v652_v19 = vpop.f32.mrf.mxu1 }
 0x4d1   :  { %v706_v22 = vadd.f32 %v705_v12, %v652_v19 }
 0x4d2   :  { %v654_v23 = vpop.f32.mrf.mxu1 }
 0x4d3   :  { %v708_v26 = vadd.f32 %v707_v15, %v654_v23  ;;  %v714_v33 = vadd.f32 %v706_v22, %v584_v27  ;;  %v1185_v22 = vmul.f32 %v1298_v18, %v1670_v41  ;;  %v1190_v41 = vpop.permute.xlu0 %1189 }
 0x4d4   :  { %v656_v28 = vpop.f32.mrf.mxu1 }
 0x4d5   :  { %v715_v29 = vadd.f32 %v708_v26, %v588_v25  ;;  %v710_v32 = vadd.f32 %v709_v21, %v656_v28  ;;  %v730_v46 = vadd.f32 %v723_v34, %v714_v33  ;;  %v1186_v28 = vmul.f32 %v1298_v18, %v1177_v24 }
 0x4d6   :  { %v658_v37 = vpop.f32.mrf.mxu1 }
 0x4d7   :  { %v716_v38 = vadd.f32 %v710_v32, %v592_v31  ;;  %v712_v42 = vadd.f32 %v711_v35, %v658_v37  ;;  %v731_v43 = vadd.f32 %v727_v30, %v715_v29  ;;  %v734_v51 = vmax.f32 %v730_v46, 0.0  ;;  %v1192_v35 = vpop.permute.xlu0 %1191 }
 0x4d9   :  { %v732_v44 = vadd.f32 %v723_v34, %v716_v38  ;;  %v717_v45 = vadd.f32 %v712_v42, %v596_v39  ;;  %v735_v49 = vmax.f32 %v731_v43, 0.0 }
 0x4db   :  { %v733_v47 = vadd.f32 %v727_v30, %v717_v45  ;;  %v736_v48 = vmax.f32 %v732_v44, 0.0  ;;  %v1236_v30 = vld [vmem:[%s1922_s13] ss:$0 sm:$0xff] }
 0x4dc   :  { %v481_v31 = vadd.f32 %v1236_v30, %v1849_v9  ;;  %v484_v36 = vadd.f32 %v1236_v30, %v1851_v13 }
 0x4dd   :  { %v737_v50 = vmax.f32 %v733_v47, 0.0  ;;  %v738_v53 = vpack.c.bf16 %v736_v48, %v734_v51 }
 0x4de   :  { %v1203_v40 = vsel %vm93_vm1, %v481_v31, %v1190_v41  ;;  %v1204_v37 = vsel %vm93_vm1, %v484_v36, %v1192_v35 }
 0x4df   :  { %v739_v52 = vpack.c.bf16 %v737_v50, %v735_v49 }
 0x4e1   :  { %976 = vmatprep.mubr.bf16.mxu1 %v739_v52 }
 0x4e2   :  { %977 = vmatmul.mubr.bf16.vlgmr.msra.gmra.mxu1 %v738_v53 }
 0x5a2   :  { %v978_v61 = vpop.f32.mrf.mxu1 }
 0x5a3   :  { %v979_v5 = vadd.f32 %v978_v61, %v777_v63 }
 0x5a4   :  { %v980_v0 = vpop.f32.mrf.mxu1 }
 0x5a5   :  { %v981_v2 = vadd.f32 %v980_v0, %v781_v62  ;;  %v987_v12 = vmax.f32 %v979_v5, 0.0 }
 0x5a6   :  { %v982_v1 = vpop.f32.mrf.mxu1 }
 0x5a7   :  { %v983_v3 = vadd.f32 %v982_v1, %v777_v63  ;;  %v988_v10 = vmax.f32 %v981_v2, 0.0 }
 0x5a8   :  { %v984_v6 = vpop.f32.mrf.mxu1 }
 0x5a9   :  { %v985_v7 = vadd.f32 %v984_v6, %v781_v62  ;;  %v989_v8 = vmax.f32 %v983_v3, 0.0 }
 0x5ab   :  { %v990_v11 = vmax.f32 %v985_v7, 0.0  ;;  %v991_v15 = vpack.c.bf16 %v989_v8, %v987_v12 }
 0x5ad   :  { %v992_v14 = vpack.c.bf16 %v990_v11, %v988_v10 }
 0x5af   :  { %1160 = vmatprep.mubr.bf16.mxu0 %v992_v14 }
 0x5b0   :  { %1161 = vmatmul.mubr.bf16.vlgmr.msra.gmra.mxu0 %v991_v15 }
 0x670   :  { %v1332_v16 = vpop.f32.mrf.mxu0 }
 0x672   :  { %v1333_v4 = vpop.f32.mrf.mxu0 }
 0x673   :  { %v1334_v19 = vadd.f32 %v1333_v4, %v1332_v16 }
 0x674   :  { %v1335_v20 = vpop.f32.mrf.mxu0 }
 0x675   :  { %v1163_v21 = vadd.f32 %v1334_v19, %v1281_v17 }
 0x676   :  { %v1336_v23 = vpop.f32.mrf.mxu0 }
 0x677   :  { %v1337_v25 = vadd.f32 %v1336_v23, %v1335_v20  ;;  %v1187_v26 = vadd.f32 %v1185_v22, %v1163_v21 }
 0x679   :  { %v1166_v27 = vadd.f32 %v1337_v25, %v1281_v17  ;;  %1197 = vrot.lane.b32.xlu1 %v1187_v26, %s1479_s21 }
 0x67b   :  { %v1188_v29 = vadd.f32 %v1186_v28, %v1166_v27 }
 0x67d   :  { %1199 = vrot.lane.b32.xlu1 %v1188_v29, %s1479_s21 }
 0x6eb   :  { %v1198_v32 = vpop.permute.xlu1 %1197 }
 0x6ec   :  { %v1206_v33 = vsel %vm1205_vm7, %v1203_v40, %v1198_v32 }
 0x6ed   :  { %v1209_v34 = vsel %vm1208_vm8, %v1206_v33, 0.0 }
 0x6ee   :  { %1211 = vst [vmem:[%s1923_s23] sm:$0xff] %v1209_v34 }
 0x6ef   :  { %v1200_v38 = vpop.permute.xlu1 %1199 }
 0x6f0   :  { %v1207_v39 = vsel %vm1205_vm7, %v1204_v37, %v1200_v38 }
 0x6f1   :  { %v1210_v9 = vsel %vm1208_vm8, %v1207_v39, 0.0 }
 0x6f2   :  { %1212 = vst [vmem:[%s1923_s23 + $0x8] sm:$0xff] %v1210_v9 }

</bundles_post_ra>
